<compile_context>
chip_gen: v6e
topology: v6e:2x2x1
jax: 0.10.0
libtpu: 0.0.40
codegen_flags: <defaults>
</compile_context>

<pallas_src>
import jax
import jax.numpy as jnp
from jax.experimental import pallas as pl
from jax.experimental.pallas import tpu as pltpu


def _split_wait_start_kernel(x_ref, w1_ref, b1_ref, w21_ref, b21_ref,
                             w22_ref, b22_ref, wait_ref, start_ref):
    # x: (TM, D)   w1: (D, H)   b1: (1, H)   w21/w22: (H, H)   b21/b22: (1, H)
    x = x_ref[...]

    # fc1 + relu (MXU, f32 accumulation)
    x1 = jnp.dot(x, w1_ref[...], preferred_element_type=jnp.float32) + b1_ref[...]
    x1 = jnp.maximum(x1, 0.0)

    # fc21 + relu -> wait head
    w = jnp.dot(x1, w21_ref[...], preferred_element_type=jnp.float32) + b21_ref[...]
    wait_ref[...] = jnp.maximum(w, 0.0).astype(wait_ref.dtype)

    # fc22 + relu -> start head
    s = jnp.dot(x1, w22_ref[...], preferred_element_type=jnp.float32) + b22_ref[...]
    start_ref[...] = jnp.maximum(s, 0.0).astype(start_ref.dtype)


def _round_up(a, m):
    return ((a + m - 1) // m) * m


def _pick_tm(B, tm):
    """Batch tile: single maximal block for small B; even step count for large B."""
    tm = _round_up(max(tm, 8), 8)
    Bp = _round_up(B, 8)
    if Bp <= tm:
        # One block: nothing to pipeline, zero per-step overhead (optimal on 1-TC chips).
        return Bp
    n_blocks = -(-Bp // tm)
    if n_blocks % 2:
        n_blocks += 1  # even step count so v7x's two TensorCores split the grid evenly
    return _round_up(-(-Bp // n_blocks), 8)


def split_wait_start(x, w1, b1, w21, b21, w22, b22, *, tm=2048):
    """x: (B, vae_dim); w*: (in, out); b*: (out,). Returns (wait, start), each (B, H)."""
    B, D = x.shape
    H = w1.shape[1]

    b1_2d = b1.reshape(1, H)
    b21_2d = b21.reshape(1, H)
    b22_2d = b22.reshape(1, H)

    TM = _pick_tm(B, tm)
    grid = (pl.cdiv(B, TM),)  # ragged last block handled by Pallas (masked writeback)

    wait, start = pl.pallas_call(
        _split_wait_start_kernel,
        out_shape=(
            jax.ShapeDtypeStruct((B, H), x.dtype),
            jax.ShapeDtypeStruct((B, H), x.dtype),
        ),
        grid=grid,
        in_specs=[
            # activations stream per grid step
            pl.BlockSpec((TM, D), lambda i: (i, 0)),
            # weights / biases pinned resident in VMEM across all grid steps
            pl.BlockSpec((D, H), lambda i: (0, 0)),
            pl.BlockSpec((1, H), lambda i: (0, 0)),
            pl.BlockSpec((H, H), lambda i: (0, 0)),
            pl.BlockSpec((1, H), lambda i: (0, 0)),
            pl.BlockSpec((H, H), lambda i: (0, 0)),
            pl.BlockSpec((1, H), lambda i: (0, 0)),
        ],
        out_specs=(
            pl.BlockSpec((TM, H), lambda i: (i, 0)),
            pl.BlockSpec((TM, H), lambda i: (i, 0)),
        ),
        compiler_params=pltpu.CompilerParams(
            dimension_semantics=("parallel",)),
    )(x, w1, b1_2d, w21, b21_2d, w22, b22_2d)

    return wait, start


def _reference(x, w1, b1, w21, b21, w22, b22):
    x1 = jax.nn.relu(x @ w1 + b1)
    return jax.nn.relu(x1 @ w21 + b21), jax.nn.relu(x1 @ w22 + b22)


if __name__ == "__main__":
    vae_dim = 32
    enc_reduce_size = 16
    batch = 8

    key = jax.random.PRNGKey(0)
    kx, k1, kb1, k21, kb21, k22, kb22 = jax.random.split(key, 7)

    x = jax.random.normal(kx, (batch, vae_dim), dtype=jnp.float32)

    # Deterministic "init" mimicking nn.Linear's uniform(-1/sqrt(fan_in), +)
    def init_linear(kw, kb, fan_in, fan_out):
        bound = 1.0 / jnp.sqrt(fan_in)
        w = jax.random.uniform(kw, (fan_in, fan_out), minval=-bound, maxval=bound,
                               dtype=jnp.float32)
        b = jax.random.uniform(kb, (fan_out,), minval=-bound, maxval=bound,
                               dtype=jnp.float32)
        return w, b

    w1, b1 = init_linear(k1, kb1, vae_dim, enc_reduce_size)
    w21, b21 = init_linear(k21, kb21, enc_reduce_size, enc_reduce_size)
    w22, b22 = init_linear(k22, kb22, enc_reduce_size, enc_reduce_size)

    # Small batch: single-block path (grid=(1,)).
    wait, start = split_wait_start(x, w1, b1, w21, b21, w22, b22)
    jax.block_until_ready((wait, start))

    wait_ref, start_ref = _reference(x, w1, b1, w21, b21, w22, b22)
    assert wait.shape == (batch, enc_reduce_size)
    assert start.shape == (batch, enc_reduce_size)
    assert jnp.allclose(wait, wait_ref, atol=1e-5, rtol=1e-5)
    assert jnp.allclose(start, start_ref, atol=1e-5, rtol=1e-5)

    # Batch not a multiple of the tile: exercises the ragged last block
    # (no wrapper-side pad, OOB output rows masked by Pallas on writeback).
    x_big = jax.random.normal(kx, (37, vae_dim), dtype=jnp.float32)
    wait_b, start_b = split_wait_start(x_big, w1, b1, w21, b21, w22, b22, tm=16)
    jax.block_until_ready((wait_b, start_b))
    wait_br, start_br = _reference(x_big, w1, b1, w21, b21, w22, b22)
    assert wait_b.shape == (37, enc_reduce_size)
    assert start_b.shape == (37, enc_reduce_size)
    assert jnp.allclose(wait_b, wait_br, atol=1e-5, rtol=1e-5)
    assert jnp.allclose(start_b, start_br, atol=1e-5, rtol=1e-5)

    print("KERNEL_OK")
</pallas_src>

<mosaic_0001>
module attributes {stable_mosaic.version = 11 : i64} {
  func.func @_split_wait_start_kernel(%arg0: i32, %arg1: memref<8x32xf32, #tpu.memory_space<vmem>>, %arg2: memref<32x16xf32, #tpu.memory_space<vmem>>, %arg3: memref<1x16xf32, #tpu.memory_space<vmem>>, %arg4: memref<16x16xf32, #tpu.memory_space<vmem>>, %arg5: memref<1x16xf32, #tpu.memory_space<vmem>>, %arg6: memref<16x16xf32, #tpu.memory_space<vmem>>, %arg7: memref<1x16xf32, #tpu.memory_space<vmem>>, %arg8: memref<8x16xf32, #tpu.memory_space<vmem>>, %arg9: memref<8x16xf32, #tpu.memory_space<vmem>>) attributes {dimension_semantics = [#tpu.dimension_semantics<parallel>], iteration_bounds = array<i64: 1>, scalar_prefetch = 0 : i64, scratch_operands = 0 : i64, tpu.core_type = #tpu.core_type<tc>, window_params = [{transform_indices = @transform_0, window_bounds = array<i64: 8, 32>}, {pipeline_mode = #tpu.pipeline_mode<synchronous>, transform_indices = @transform_1, window_bounds = array<i64: 32, 16>}, {pipeline_mode = #tpu.pipeline_mode<synchronous>, transform_indices = @transform_2, window_bounds = array<i64: 1, 16>}, {pipeline_mode = #tpu.pipeline_mode<synchronous>, transform_indices = @transform_3, window_bounds = array<i64: 16, 16>}, {pipeline_mode = #tpu.pipeline_mode<synchronous>, transform_indices = @transform_4, window_bounds = array<i64: 1, 16>}, {pipeline_mode = #tpu.pipeline_mode<synchronous>, transform_indices = @transform_5, window_bounds = array<i64: 16, 16>}, {pipeline_mode = #tpu.pipeline_mode<synchronous>, transform_indices = @transform_6, window_bounds = array<i64: 1, 16>}, {transform_indices = @transform_7, window_bounds = array<i64: 8, 16>}, {transform_indices = @transform_8, window_bounds = array<i64: 8, 16>}]} {
    %c0 = arith.constant 0 : index
    %c0_0 = arith.constant 0 : index
    %0 = vector.load %arg1[%c0, %c0_0] : memref<8x32xf32, #tpu.memory_space<vmem>>, vector<8x32xf32>
    %c0_1 = arith.constant 0 : index
    %c0_2 = arith.constant 0 : index
    %1 = vector.load %arg2[%c0_1, %c0_2] : memref<32x16xf32, #tpu.memory_space<vmem>>, vector<32x16xf32>
    %cst = arith.constant dense<0.000000e+00> : vector<8x16xf32>
    %2 = tpu.matmul %0, %1, %cst {dimension_numbers = #tpu.dot_dimension_numbers<[1], [0], [0], [1], [0, 0, 1, 1], [], []>} : vector<8x32xf32>, vector<32x16xf32>, vector<8x16xf32> -> vector<8x16xf32>
    %c0_3 = arith.constant 0 : index
    %c0_4 = arith.constant 0 : index
    %3 = vector.load %arg3[%c0_3, %c0_4] : memref<1x16xf32, #tpu.memory_space<vmem>>, vector<1x16xf32>
    %4 = vector.broadcast %3 : vector<1x16xf32> to vector<8x16xf32>
    %5 = arith.addf %2, %4 : vector<8x16xf32>
    %cst_5 = arith.constant 0.000000e+00 : f32
    %6 = vector.broadcast %cst_5 : f32 to vector<8x16xf32>
    %7 = arith.maximumf %5, %6 : vector<8x16xf32>
    %c0_6 = arith.constant 0 : index
    %c0_7 = arith.constant 0 : index
    %8 = vector.load %arg4[%c0_6, %c0_7] : memref<16x16xf32, #tpu.memory_space<vmem>>, vector<16x16xf32>
    %cst_8 = arith.constant dense<0.000000e+00> : vector<8x16xf32>
    %9 = tpu.matmul %7, %8, %cst_8 {dimension_numbers = #tpu.dot_dimension_numbers<[1], [0], [0], [1], [0, 0, 1, 1], [], []>} : vector<8x16xf32>, vector<16x16xf32>, vector<8x16xf32> -> vector<8x16xf32>
    %c0_9 = arith.constant 0 : index
    %c0_10 = arith.constant 0 : index
    %10 = vector.load %arg5[%c0_9, %c0_10] : memref<1x16xf32, #tpu.memory_space<vmem>>, vector<1x16xf32>
    %11 = vector.broadcast %10 : vector<1x16xf32> to vector<8x16xf32>
    %12 = arith.addf %9, %11 : vector<8x16xf32>
    %cst_11 = arith.constant 0.000000e+00 : f32
    %13 = vector.broadcast %cst_11 : f32 to vector<8x16xf32>
    %14 = arith.maximumf %12, %13 : vector<8x16xf32>
    %c0_12 = arith.constant 0 : index
    %c0_13 = arith.constant 0 : index
    %15 = vector.load %arg8[%c0_12, %c0_13] : memref<8x16xf32, #tpu.memory_space<vmem>>, vector<8x16xf32>
    tpu.vector_store %arg8[%c0_12, %c0_13], %14 {strides = array<i32>} : memref<8x16xf32, #tpu.memory_space<vmem>>, vector<8x16xf32>,
    %c0_14 = arith.constant 0 : index
    %c0_15 = arith.constant 0 : index
    %16 = vector.load %arg6[%c0_14, %c0_15] : memref<16x16xf32, #tpu.memory_space<vmem>>, vector<16x16xf32>
    %cst_16 = arith.constant dense<0.000000e+00> : vector<8x16xf32>
    %17 = tpu.matmul %7, %16, %cst_16 {dimension_numbers = #tpu.dot_dimension_numbers<[1], [0], [0], [1], [0, 0, 1, 1], [], []>} : vector<8x16xf32>, vector<16x16xf32>, vector<8x16xf32> -> vector<8x16xf32>
    %c0_17 = arith.constant 0 : index
    %c0_18 = arith.constant 0 : index
    %18 = vector.load %arg7[%c0_17, %c0_18] : memref<1x16xf32, #tpu.memory_space<vmem>>, vector<1x16xf32>
    %19 = vector.broadcast %18 : vector<1x16xf32> to vector<8x16xf32>
    %20 = arith.addf %17, %19 : vector<8x16xf32>
    %cst_19 = arith.constant 0.000000e+00 : f32
    %21 = vector.broadcast %cst_19 : f32 to vector<8x16xf32>
    %22 = arith.maximumf %20, %21 : vector<8x16xf32>
    %c0_20 = arith.constant 0 : index
    %c0_21 = arith.constant 0 : index
    %23 = vector.load %arg9[%c0_20, %c0_21] : memref<8x16xf32, #tpu.memory_space<vmem>>, vector<8x16xf32>
    tpu.vector_store %arg9[%c0_20, %c0_21], %22 {strides = array<i32>} : memref<8x16xf32, #tpu.memory_space<vmem>>, vector<8x16xf32>,
    return
  }
  func.func @transform_0(%arg0: i32) -> (i32, i32) {
    %c0_i32 = arith.constant 0 : i32
    %c0_i32_0 = arith.constant 0 : i32
    return %arg0, %c0_i32 : i32, i32
  }
  func.func @transform_1(%arg0: i32) -> (i32, i32) {
    %c0_i32 = arith.constant 0 : i32
    %c0_i32_0 = arith.constant 0 : i32
    %c0_i32_1 = arith.constant 0 : i32
    return %c0_i32, %c0_i32_0 : i32, i32
  }
  func.func @transform_2(%arg0: i32) -> (i32, i32) {
    %c0_i32 = arith.constant 0 : i32
    %c0_i32_0 = arith.constant 0 : i32
    %c0_i32_1 = arith.constant 0 : i32
    return %c0_i32, %c0_i32_0 : i32, i32
  }
  func.func @transform_3(%arg0: i32) -> (i32, i32) {
    %c0_i32 = arith.constant 0 : i32
    %c0_i32_0 = arith.constant 0 : i32
    %c0_i32_1 = arith.constant 0 : i32
    return %c0_i32, %c0_i32_0 : i32, i32
  }
  func.func @transform_4(%arg0: i32) -> (i32, i32) {
    %c0_i32 = arith.constant 0 : i32
    %c0_i32_0 = arith.constant 0 : i32
    %c0_i32_1 = arith.constant 0 : i32
    return %c0_i32, %c0_i32_0 : i32, i32
  }
  func.func @transform_5(%arg0: i32) -> (i32, i32) {
    %c0_i32 = arith.constant 0 : i32
    %c0_i32_0 = arith.constant 0 : i32
    %c0_i32_1 = arith.constant 0 : i32
    return %c0_i32, %c0_i32_0 : i32, i32
  }
  func.func @transform_6(%arg0: i32) -> (i32, i32) {
    %c0_i32 = arith.constant 0 : i32
    %c0_i32_0 = arith.constant 0 : i32
    %c0_i32_1 = arith.constant 0 : i32
    return %c0_i32, %c0_i32_0 : i32, i32
  }
  func.func @transform_7(%arg0: i32) -> (i32, i32) {
    %c0_i32 = arith.constant 0 : i32
    %c0_i32_0 = arith.constant 0 : i32
    return %arg0, %c0_i32 : i32, i32
  }
  func.func @transform_8(%arg0: i32) -> (i32, i32) {
    %c0_i32 = arith.constant 0 : i32
    %c0_i32_0 = arith.constant 0 : i32
    return %arg0, %c0_i32 : i32, i32
  }
}

</mosaic_0001>

<bundles_post_ra>
// kernel: tpu_custom_call.1
= control target key start
LH: loop header
LB: loop body
LE: loop exit
PB: predicated region body
PF: predicated region fallthrough
CT: control target
= control target key end

     0   :  { %14 = vsyncpa [#allocation3], 0  ;;  %v401_v1 = vmov 0.0   ;;  %vm402_vm0 = vmmov 0   ;;  %s499_s0 = inlined_call_operand.vmem [shape: f32[8,32], index: 0, kind: input, shape index: {}]   ;;  %s500_s1 = inlined_call_operand.vmem [shape: f32[32,16], index: 1, kind: input, shape index: {}]   ;;  %s501_s2 = inlined_call_operand.vmem [shape: f32[1,16], index: 2, kind: input, shape index: {}]   ;;  %s502_s3 = inlined_call_operand.vmem [shape: f32[16,16], index: 3, kind: input, shape index: {}]   ;;  %s503_s4 = inlined_call_operand.vmem [shape: f32[1,16], index: 4, kind: input, shape index: {}]   ;;  %s504_s5 = inlined_call_operand.vmem [shape: f32[16,16], index: 5, kind: input, shape index: {}]   ;;  %s505_s6 = inlined_call_operand.vmem [shape: f32[1,16], index: 6, kind: input, shape index: {}]   ;;  %s506_s7 = inlined_call_operand.hbm [shape: f32[8,16], index: 7, kind: output, shape index: {0}]   ;;  %s507_s8 = inlined_call_operand.hbm [shape: f32[8,16], index: 8, kind: output, shape index: {1}]  }
   0x1   :  { %v34_v0 = vld [vmem:[%s500_s1 + $0x18] sm:$0xff]  ;;  %328 = vmatprep.subr.mxu0 %v401_v1  ;;  %v33_v2 = vld [vmem:[%s500_s1 + $0x10] sm:$0xff]  ;;  %336 = vmatprep.mubr.msk.f32.mxu0 %vm402_vm0, %v401_v1 }
   0x2   :  { %329 = vmatpush3.msra.mxu0 %v34_v0  ;;  %339 = vmatprep.subr.mxu1 %v401_v1 }
   0x3   :  { %15 = vsyncpa [#allocation5], 0  ;;  %330 = vmatprep.subr.mxu0 %v401_v1  ;;  %v32_v3 = vld [vmem:[%s500_s1 + $0x8] sm:$0xff]  ;;  %343 = vmatprep.mubr.msk.f32.mxu1 %vm402_vm0, %v401_v1  ;;  %v31_v4 = vld [vmem:[%s500_s1] sm:$0xff]  ;;  %vm42_vm1 = vcmask 261120   ;;  %vm126_vm2 = vcmask 130048  }
   0x4   :  { %331 = vmatpush3.msra.mxu0 %v33_v2  ;;  %v30_v5 = vld [vmem:[%s499_s0] sm:$0xff]  ;;  %v118_v6 = vld [vmem:[%s502_s3 + $0x8] sm:$0xff]  ;;  %s403_s23 = smov [#allocation2]  }
   0x5   :  { %332 = vmatprep.subr.mxu0 %v401_v1  ;;  %340 = vmatpush3.msra.mxu1 %v118_v6  ;;  %v117_v7 = vld [vmem:[%s502_s3] sm:$0xff]  ;;  %v203_v13 = vld [vmem:[%s504_s5 + $0x8] sm:$0xff]  ;;  %s289_s24 = sshll.u32 %s403_s23, 4  ;;  %s290_s24 = int_to_ptr.vmem [resolvable:$true] %s289_s24 }
   0x6   :  { %333 = vmatpush3.msra.mxu0 %v32_v3  ;;  %341 = vmatprep.subr.mxu1 %v401_v1  ;;  %v311_v8 = vld [vmem:[%s501_s2] ss:$0 sm:$0xff]  ;;  %s357_s28 = scalar_lea.vmem %s290_s24, 128  ;;  %p362_p1 = scmp.lt.s32.totalorder %s290_s24, %s290_s24 }
   0x7   :  { %334 = vmatprep.subr.mxu0 %v401_v1  ;;  %342 = vmatpush3.msra.mxu1 %v117_v7  ;;  %v202_v14 = vld [vmem:[%s504_s5] sm:$0xff]  ;;  %s404_s5 = smov [#allocation4]   ;;  %p358_p0 = scmp.ne.s32.totalorder %s290_s24, %s357_s28 }
   0x8   :  { %335 = vmatpush3.msra.mxu0 %v31_v4  ;;  %346 = vmatprep.subr.mxu1 %v401_v1  ;;  %v313_v15 = vld [vmem:[%s503_s4] ss:$0 sm:$0xff]  ;;  %s299_s27 = sshll.u32 %s404_s5, 4  ;;  %p363_p2 = scmp.lt.s32.totalorder %s357_s28, %s357_s28  ;;  %s300_s27 = int_to_ptr.vmem [resolvable:$true] %s299_s27 }
   0x9   :  { %337 = vmatmul.mubr.msk.f32.vlgmr.msra.gmra.mxu0 %vm42_vm1, %v30_v5  ;;  %v315_v19 = vld [vmem:[%s505_s6] ss:$0 sm:$0xff] }
   0xa   :  { %p364_p3 = por %p363_p2, %p362_p1 }
   0xc   :  { %p365_p4 = pnand %p364_p3, %p358_p0 }
  0xc9   :  { %v112_v9 = vpop.f32.mrf.mxu0 }
  0xca   :  { %v113_v10 = vadd.f32 %v311_v8, %v112_v9 }
  0xcb   :  { %v338_v11 = vpop.f32.mrf.mxu0 }
  0xcc   :  { %v116_v12 = vmax.f32 %v113_v10, 0.0 }
  0xce   :  { %344 = vmatmul.mubr.msk.f32.vlgmr.msra.gmra.mxu1 %vm126_vm2, %v116_v12 }
  0xcf   :  { %347 = vmatpush3.msra.mxu1 %v203_v13  ;;  %350 = vmatprep.mubr.msk.f32.mxu1 %vm402_vm0, %v401_v1 }
  0xd0   :  { %348 = vmatprep.subr.mxu1 %v401_v1 }
  0xd1   :  { %349 = vmatpush3.msra.mxu1 %v202_v14 }
  0xd2   :  { %351 = vmatmul.mubr.msk.f32.vlgmr.msra.gmra.mxu1 %vm126_vm2, %v116_v12 }
 0x18e   :  { %v196_v16 = vpop.f32.mrf.mxu1 }
 0x18f   :  { %v197_v17 = vadd.f32 %v313_v15, %v196_v16 }
 0x190   :  { %v345_v18 = vpop.f32.mrf.mxu1 }
 0x191   :  { %v200_v20 = vmax.f32 %v197_v17, 0.0 }
 0x192   :  { %v277_v21 = vpop.f32.mrf.mxu1 }
 0x193   :  { %201 = vst.msk [vmem:[#allocation2] sm:$0xff] %vm126_vm2, %v200_v20  ;;  %v278_v22 = vadd.f32 %v315_v19, %v277_v21 }
 0x194   :  { %v352_v23 = vpop.f32.mrf.mxu1 }
 0x195   :  { %368 = shalt.err (!%p365_p4)
}
 0x196   :  { %292 = dma.vmem_to_hbm [thread:$0]  %s290_s24, 128, %s506_s7, [#allocation3]   ;;  %v281_v24 = vmax.f32 %v278_v22, 0.0 }
 0x197   :  { %s377_s6 = scalar_lea.vmem %s300_s27, 128  ;;  %p382_p6 = scmp.lt.s32.totalorder %s300_s27, %s300_s27 }
 0x198   :  { %282 = vst.msk [vmem:[#allocation4] sm:$0xff] %vm126_vm2, %v281_v24  ;;  %p378_p5 = scmp.ne.s32.totalorder %s300_s27, %s377_s6  ;;  %p383_p7 = scmp.lt.s32.totalorder %s377_s6, %s377_s6 }
 0x19a   :  { %p384_p8 = por %p383_p7, %p382_p6 }
 0x19c   :  { %p385_p9 = pnand %p384_p8, %p378_p5 }
 0x19e   :  { %388 = shalt.err (!%p385_p9)
}
 0x19f   :  { %302 = dma.vmem_to_hbm [thread:$0]  %s300_s27, 128, %s507_s8, [#allocation5]  }
 0x1a0   :  { %397 = dma.done.wait [#allocation3], 128  }
 0x1a1   :  { %398 = vsyncadd [#allocation3], 4294967168 }
 0x1a2   :  { %399 = dma.done.wait [#allocation5], 128  }
 0x1a3   :  { %400 = vsyncadd [#allocation5], 4294967168 }
 0x1a4   :  { %309 = vsyncpa [#allocation3], 1 }
 0x1a5   :  { %310 = vsyncpa [#allocation5], 1 }

</bundles_post_ra>
